<compile_context>
chip_gen: v6e
topology: v6e:2x2x1
jax: 0.10.0
libtpu: 0.0.40
codegen_flags: <defaults>
</compile_context>

<pallas_src>
import functools
import math

import jax
import jax.numpy as jnp
from jax.experimental import pallas as pl
from jax.experimental.pallas import tpu as pltpu

SCALE = 1.0 / math.sqrt(768.0)   # exactly what the module's __init__ hard-codes
P_DROP = 0.5


def _sdpa_kernel(x_ref, y_ref, mask_ref, o_ref, *, scale, training):
    # x_ref:    (M, D)   f32, same block every grid step (not re-DMA'd)
    # y_ref:    (Nt, D)  f32, N-tile k
    # mask_ref: (M, Nt)  f32, inverted-dropout multiplier tile (0 or 1/(1-p))
    # o_ref:    (M, D)   f32 output; constant block index across the reduction
    #                    axis => resident in VMEM and used as the accumulator.
    k = pl.program_id(0)

    @pl.when(k == 0)
    def _():
        o_ref[...] = jnp.zeros_like(o_ref)

    # Fold the scale into x (M*D elements, not M*N) and lower matmul operands
    # to bf16 for native MXU throughput; accumulate in f32.
    xb = (x_ref[...] * scale).astype(jnp.bfloat16)          # (M, D)
    yb = y_ref[...].astype(jnp.bfloat16)                     # (Nt, D)

    # qk tile = x @ y_tile.T  -> (M, Nt), contracting on D without a transpose.
    qk = jax.lax.dot_general(
        xb, yb, (((1,), (1,)), ((), ())), preferred_element_type=jnp.float32
    )

    # softmax over dim=-2 (the M axis).  Each column lives entirely inside this
    # N-tile, so the per-tile reduction over M is exact.
    m = jnp.max(qk, axis=0, keepdims=True)                   # (1, Nt)
    e = jnp.exp(qk - m)                                      # (M, Nt)
    inv = 1.0 / jnp.sum(e, axis=0, keepdims=True)            # (1, Nt)
    p = e * inv                                              # (M, Nt)

    if training:
        # Inverted dropout: mask already carries the 1/(1-p) keep-scale.
        p = p * mask_ref[...]

    # Accumulate the V-side matmul: (M, Nt) @ (Nt, D) -> (M, D), f32 accumulate.
    o_ref[...] += jnp.dot(p.astype(jnp.bfloat16), yb,
                          preferred_element_type=jnp.float32)
    # TODO(synk): if the output dtype ever becomes sub-f32, switch the direct
    # o_ref accumulation to a pltpu.VMEM((M, D), f32) scratch accumulator.


def model_forward(x, y, *, dropout_mask=None, training=True, block_n=128):
    """x: (M, D) f32, y: (N, D) f32, dropout_mask: (M, N) f32 multiplier.

    Returns (M, D) f32 = dropout(softmax_{dim=-2}(x @ y.T * scale)) @ y.
    """
    M, D = x.shape
    N, D2 = y.shape
    assert D == D2, "x and y must share the feature (D) dimension"

    if N % block_n != 0:
        block_n = N                        # fall back to a single N tile
    num_n_tiles = N // block_n

    if dropout_mask is None:               # eval / no-op mask
        dropout_mask = jnp.ones((M, N), dtype=jnp.float32)

    kernel = functools.partial(_sdpa_kernel, scale=SCALE, training=training)

    return pl.pallas_call(
        kernel,
        out_shape=jax.ShapeDtypeStruct((M, D), jnp.float32),
        grid=(num_n_tiles,),
        in_specs=[
            pl.BlockSpec((M, D), lambda k: (0, 0)),          # x: same block all steps
            pl.BlockSpec((block_n, D), lambda k: (k, 0)),    # y: N-tile k
            pl.BlockSpec((M, block_n), lambda k: (0, k)),    # dropout mask tile
        ],
        out_specs=pl.BlockSpec((M, D), lambda k: (0, 0)),    # accumulator block
        compiler_params=pltpu.CompilerParams(
            dimension_semantics=("arbitrary",),              # reduction axis
        ),
    )(x, y, dropout_mask)


def _reference(x, y, mask=None):
    # Pure-JAX f32 reference of the forward pass; `mask` is the explicit
    # inverted-dropout multiplier (None == eval mode).
    qk = (x @ y.T) * SCALE
    sm = jax.nn.softmax(qk.T, axis=-1).T       # softmax over dim=-2
    if mask is not None:
        sm = sm * mask
    return sm @ y


if __name__ == "__main__":
    key = jax.random.PRNGKey(0)
    kx, ky, kd = jax.random.split(key, 3)

    # Small, (8,128)-aligned shapes consistent with the forward pass.
    M, D, N = 64, 128, 256
    x = jax.random.normal(kx, (M, D), dtype=jnp.float32)
    y = jax.random.normal(ky, (N, D), dtype=jnp.float32)

    # Eval-mode check (deterministic path).  Tolerance relaxed because the
    # kernel runs the matmuls with bf16 operands (f32 accumulate).
    out_eval = model_forward(x, y, training=False)
    jax.block_until_ready(out_eval)
    ref_eval = _reference(x, y)
    assert jnp.allclose(out_eval, ref_eval, atol=2e-2, rtol=2e-2), "eval mismatch"

    # Training-mode (module default): deterministic inverted-dropout mask, p=0.5.
    keep = jax.random.bernoulli(kd, 1.0 - P_DROP, (M, N))
    mask = keep.astype(jnp.float32) * (1.0 / (1.0 - P_DROP))
    out_train = model_forward(x, y, dropout_mask=mask, training=True)
    jax.block_until_ready(out_train)
    ref_train = _reference(x, y, mask)
    assert out_train.shape == (M, D)
    assert jnp.allclose(out_train, ref_train, atol=2e-2, rtol=2e-2), "train mismatch"

    print("KERNEL_OK")
</pallas_src>

<mosaic_0001>
module attributes {stable_mosaic.version = 11 : i64} {
  func.func @_sdpa_kernel(%arg0: i32, %arg1: memref<64x128xf32, #tpu.memory_space<vmem>>, %arg2: memref<128x128xf32, #tpu.memory_space<vmem>>, %arg3: memref<64x128xf32, #tpu.memory_space<vmem>>, %arg4: memref<64x128xf32, #tpu.memory_space<vmem>>) attributes {dimension_semantics = [#tpu.dimension_semantics<arbitrary>], iteration_bounds = array<i64: 2>, scalar_prefetch = 0 : i64, scratch_operands = 0 : i64, tpu.core_type = #tpu.core_type<tc>, window_params = [{pipeline_mode = #tpu.pipeline_mode<synchronous>, transform_indices = @transform_0, window_bounds = array<i64: 64, 128>}, {transform_indices = @transform_1, window_bounds = array<i64: 128, 128>}, {transform_indices = @transform_2, window_bounds = array<i64: 64, 128>}, {pipeline_mode = #tpu.pipeline_mode<synchronous>, transform_indices = @transform_3, window_bounds = array<i64: 64, 128>}]} {
    %c0_i32 = arith.constant 0 : i32
    %0 = arith.cmpi eq, %arg0, %c0_i32 : i32
    %1 = arith.extui %0 : i1 to i32
    %c0_i32_0 = arith.constant 0 : i32
    %2 = arith.cmpi ne, %1, %c0_i32_0 : i32
    scf.if %2 {
      %cst_13 = arith.constant 0.000000e+00 : f32
      %26 = vector.broadcast %cst_13 : f32 to vector<64x128xf32>
      %c0_14 = arith.constant 0 : index
      %c0_15 = arith.constant 0 : index
      %27 = vector.load %arg4[%c0_14, %c0_15] : memref<64x128xf32, #tpu.memory_space<vmem>>, vector<64x128xf32>
      tpu.vector_store %arg4[%c0_14, %c0_15], %26 {strides = array<i32>} : memref<64x128xf32, #tpu.memory_space<vmem>>, vector<64x128xf32>,
    } else {
    }
    %c0 = arith.constant 0 : index
    %c0_1 = arith.constant 0 : index
    %3 = vector.load %arg1[%c0, %c0_1] : memref<64x128xf32, #tpu.memory_space<vmem>>, vector<64x128xf32>
    %cst = arith.constant 0.0360843912 : f32
    %4 = vector.broadcast %cst : f32 to vector<64x128xf32>
    %5 = arith.mulf %3, %4 : vector<64x128xf32>
    %6 = arith.truncf %5 : vector<64x128xf32> to vector<64x128xbf16>
    %c0_2 = arith.constant 0 : index
    %c0_3 = arith.constant 0 : index
    %7 = vector.load %arg2[%c0_2, %c0_3] : memref<128x128xf32, #tpu.memory_space<vmem>>, vector<128x128xf32>
    %8 = arith.truncf %7 : vector<128x128xf32> to vector<128x128xbf16>
    %cst_4 = arith.constant dense<0.000000e+00> : vector<64x128xf32>
    %9 = tpu.matmul %6, %8, %cst_4 {dimension_numbers = #tpu.dot_dimension_numbers<[1], [1], [0], [0], [0, 0, 1, 0], [], []>} : vector<64x128xbf16>, vector<128x128xbf16>, vector<64x128xf32> -> vector<64x128xf32>
    %cst_5 = arith.constant dense<0xFF800000> : vector<128xf32>
    %10 = vector.multi_reduction <maximumf>, %9, %cst_5 [0] : vector<64x128xf32> to vector<128xf32>
    %11 = vector.shape_cast %10 : vector<128xf32> to vector<1x128xf32>
    %12 = vector.broadcast %11 : vector<1x128xf32> to vector<64x128xf32>
    %13 = arith.subf %9, %12 : vector<64x128xf32>
    %14 = math.exp %13 : vector<64x128xf32>
    %cst_6 = arith.constant dense<0.000000e+00> : vector<128xf32>
    %15 = vector.multi_reduction <add>, %14, %cst_6 [0] : vector<64x128xf32> to vector<128xf32>
    %16 = vector.shape_cast %15 : vector<128xf32> to vector<1x128xf32>
    %cst_7 = arith.constant 1.000000e+00 : f32
    %17 = vector.broadcast %cst_7 : f32 to vector<1x128xf32>
    %18 = arith.divf %17, %16 : vector<1x128xf32>
    %19 = vector.broadcast %18 : vector<1x128xf32> to vector<64x128xf32>
    %20 = arith.mulf %14, %19 : vector<64x128xf32>
    %c0_8 = arith.constant 0 : index
    %c0_9 = arith.constant 0 : index
    %21 = vector.load %arg4[%c0_8, %c0_9] : memref<64x128xf32, #tpu.memory_space<vmem>>, vector<64x128xf32>
    %22 = arith.truncf %20 : vector<64x128xf32> to vector<64x128xbf16>
    %cst_10 = arith.constant dense<0.000000e+00> : vector<64x128xf32>
    %23 = tpu.matmul %22, %8, %cst_10 {dimension_numbers = #tpu.dot_dimension_numbers<[1], [0], [0], [1], [0, 0, 1, 1], [], []>} : vector<64x128xbf16>, vector<128x128xbf16>, vector<64x128xf32> -> vector<64x128xf32>
    %24 = arith.addf %21, %23 : vector<64x128xf32>
    %c0_11 = arith.constant 0 : index
    %c0_12 = arith.constant 0 : index
    %25 = vector.load %arg4[%c0_11, %c0_12] : memref<64x128xf32, #tpu.memory_space<vmem>>, vector<64x128xf32>
    tpu.vector_store %arg4[%c0_11, %c0_12], %24 {strides = array<i32>} : memref<64x128xf32, #tpu.memory_space<vmem>>, vector<64x128xf32>,
    return
  }
  func.func @transform_0(%arg0: i32) -> (i32, i32) {
    %c0_i32 = arith.constant 0 : i32
    %c0_i32_0 = arith.constant 0 : i32
    %c0_i32_1 = arith.constant 0 : i32
    return %c0_i32, %c0_i32_0 : i32, i32
  }
  func.func @transform_1(%arg0: i32) -> (i32, i32) {
    %c0_i32 = arith.constant 0 : i32
    %c0_i32_0 = arith.constant 0 : i32
    return %arg0, %c0_i32 : i32, i32
  }
  func.func @transform_2(%arg0: i32) -> (i32, i32) {
    %c0_i32 = arith.constant 0 : i32
    %c0_i32_0 = arith.constant 0 : i32
    return %c0_i32, %arg0 : i32, i32
  }
  func.func @transform_3(%arg0: i32) -> (i32, i32) {
    %c0_i32 = arith.constant 0 : i32
    %c0_i32_0 = arith.constant 0 : i32
    %c0_i32_1 = arith.constant 0 : i32
    return %c0_i32, %c0_i32_0 : i32, i32
  }
}

</mosaic_0001>

<bundles_post_ra>
// kernel: tpu_custom_call.1
= control target key start
LH: loop header
LB: loop body
LE: loop exit
PB: predicated region body
PF: predicated region fallthrough
CT: control target
= control target key end

     0   :  { %8 = vsyncpa [#allocation3], 0  ;;  %s1165_s0 = inlined_call_operand.hbm [shape: f32[64,128], index: 0, kind: input, shape index: {}]   ;;  %s1166_s1 = inlined_call_operand.hbm [shape: f32[256,128], index: 1, kind: input, shape index: {}]   ;;  %s1167_s2 = inlined_call_operand.hbm [shape: f32[64,256], index: 2, kind: input, shape index: {}]   ;;  %s1168_s3 = inlined_call_operand.hbm [shape: f32[64,128], index: 3, kind: output, shape index: {}]  }
   0x1   :  { %9 = vsyncpa [#allocation6], 0 }
   0x2   :  { %11 = vsyncpa [#allocation6 + $0x1], 0 }
   0x3   :  { %12 = vsyncpa [#allocation4], 0  ;;  %s951_s12 = smov 0   ;;  %s953_s13 = smov 0  }
   0x4   :  { %s955_s14 = smov 0   ;;  %s957_s15 = smov 0  }
   0x5 LB: > { %s972_s16 = sadd.s32 1, %s919_s15   ;;  %s46_s17 = sadd.s32 1, %s915_s14  ;;  %s919_s15 = sphi %s957_s15, %s1184_s15   ;;  %s915_s14 = sphi %s955_s14, %s1183_s14   ;;  %s911_s13 = sphi %s953_s13, %s1182_s13   ;;  %s907_s12 = sphi %s951_s12, %s1181_s12  }
   0x6   : > { %s43_s18 = ssub.s32 %s919_s15, %s972_s16  ;;  %p53_p0 = scmp.ne.s32.totalorder %s915_s14, %s911_s13 }
   0x7   : > { %p44_p1 = scmp.eq.s32.totalorder %s43_s18, 0  ;;  %p54_p2 = scmp.eq.s32.totalorder %s919_s15, 0 }
   0x8   : > { %p709_p4 = scmp.lt.s32.totalorder %s919_s15, 2  ;;  %s143_s20 = sand.u32 1, %s919_s15  }
   0x9   : > { %s981_s19 = scalar_select %p44_p1, %s915_s14, %s46_s17  }
   0xa   : > { %p55_p3 = por %p54_p2, %p53_p0  ;;  %s145_s21 = sand.u32 1, %s915_s14  }
   0xb   : > { %s599_s22 = sshll.u32 %s145_s21, 7  ;;  %s612_s23 = sshll.u32 %s919_s15, 11 }
   0xc   : > { %s990_s26 = scalar_lea.hbm %s1166_s1, %s612_s23  ;;  %s147_s27 = scalar_lea.vmem [#allocation5], %s599_s22 }
   0xd   : > { %s154_s28 = sshll.u32 %s147_s27, 4  ;;  %p992_p5 = pnand %p709_p4, %p55_p3  ;;  %s996_s28 = int_to_ptr.vmem [resolvable:$true] %s154_s28 }
   0xe   : > { %s998_s30 = sshll.u32 %s145_s21, 6  ;;  %s1000_s4 = scalar_lea.sflag [#allocation6], %s143_s20 }
   0xf   : > { %s771_s5 = scalar_lea.hbm %s990_s26, 2048  ;;  %p773_p7 = pneg %p992_p5 }
  0x10   : > { %p772_p6 = scmp.ne.s32.totalorder %s990_s26, %s771_s5  ;;  %s776_s8 = scalar_lea.hbm %s1166_s1, 4096 }
  0x11   : > { %p777_p10 = scmp.lt.s32.totalorder %s990_s26, %s1166_s1  ;;  %p778_p11 = scmp.lt.s32.totalorder %s776_s8, %s771_s5 }
  0x12   : > { %p774_p8 = pnand %p773_p7, %p772_p6 }
  0x13   : > { %p779_p12 = por %p778_p11, %p777_p10 }
  0x14   : > { %p775_p9 = pneg %p774_p8 }
  0x16   : > { %p780_p13 = pnand %p779_p12, %p775_p9 }
  0x18   : > { %783 = shalt.err (!%p780_p13)
}
  0x19   : > { %s784_s11 = scalar_lea.vmem %s996_s28, 2048  ;;  %s921_s17 = smov [#allocation5]  }
  0x1a   : > { %p785_p0 = scmp.ne.s32.totalorder %s996_s28, %s784_s11  ;;  %s789_s18 = sshll.u32 %s921_s17, 4  ;;  %s790_s18 = int_to_ptr.vmem [resolvable:$false] %s789_s18 }
  0x1b   : > { %s791_s20 = scalar_lea.vmem %s790_s18, 4096  ;;  %p792_p3 = scmp.lt.s32.totalorder %s996_s28, %s790_s18 }
  0x1c   : > { %p787_p1 = pnand %p785_p0, %p773_p7  ;;  %p793_p4 = scmp.lt.s32.totalorder %s791_s20, %s784_s11 }
  0x1e   : > { %p788_p2 = pneg %p787_p1  ;;  %p794_p6 = por %p793_p4, %p792_p3 }
  0x20   : > { %p795_p8 = pnand %p794_p6, %p788_p2 }
  0x22   : > { %798 = shalt.err (!%p795_p8)
}
  0x23   : > { %s922_s21 = smov 128   ;;  %s923_s22 = smov 8  }
  0x24   : > { %704 = dma.hbm_to_vmem [thread:$0]  (!%p992_p5), %s990_s26, 2048, %s996_s28, %s1000_s4, %s922_s21, %s922_s21, %s923_s22  }
  0x25   : > { %s168_s23 = scalar_lea.vmem [#allocation7], %s998_s30  ;;  %s1032_s25 = sadd.s32 4294967295, %s919_s15  }
  0x26   : > { %s174_s24 = sshll.u32 %s168_s23, 4  ;;  %p59_p9 = scmp.ne.s32.totalorder %s911_s13, %s907_s12  ;;  %s1046_s24 = int_to_ptr.vmem [resolvable:$true] %s174_s24 }
  0x27   : > { %p1169_p10 = scmp.eq.s32.totalorder %s1032_s25, 0  ;;  %p596_p11 = scmp.ge.s32.totalorder %s919_s15, 1 }
  0x28   : > { %p117_p12 = scmp.lt.s32.totalorder %s919_s15, 3  ;;  %s924_s28 = smov [#allocation2]  }
  0x29   : > { %p1042_p0 = por %p1169_p10, %p59_p9  ;;  %s129_s30 = sshll.u32 %s924_s28, 4  ;;  %s1060_s30 = int_to_ptr.vmem [resolvable:$true] %s129_s30 }
  0x2a   : > { %p1048_p1 = pnand %p596_p11, %p117_p12  ;;  %s603_s12 = sshll.u32 %s919_s15, 7 }
  0x2b   : > { %s1173_s27 = scalar_select %p1042_p0, 1, 0 }
  0x2c   : > { %s1174_s26 = scalar_select %p1048_p1, 1, 0 }
  0x2d   : > { %p697_p2 = pneg %p1048_p1  ;;  %s1058_s7 = scalar_lea.hbm %s1167_s2, %s603_s12 }
  0x2e   : > { %s799_s9 = scalar_lea.hbm %s1058_s7, 1024  ;;  %s804_s11 = scalar_lea.hbm %s1167_s2, 2048 }
  0x2f   : > { %p1064_p3 = pnand %p697_p2, %p1169_p10  ;;  %p800_p4 = scmp.ne.s32.totalorder %s1058_s7, %s799_s9 }
  0x30   : > { %p805_p9 = scmp.lt.s32.totalorder %s1058_s7, %s1167_s2  ;;  %p806_p11 = scmp.lt.s32.totalorder %s804_s11, %s799_s9 }
  0x31   : > { %p802_p6 = pnand %p800_p4, %p773_p7 }
  0x32   : > { %p807_p12 = por %p806_p11, %p805_p9 }
  0x33   : > { %p803_p8 = pneg %p802_p6 }
  0x35   : > { %p808_p2 = pnand %p807_p12, %p803_p8 }
  0x37   : > { %811 = shalt.err (!%p808_p2)
}
  0x38   : > { %s812_s20 = scalar_lea.vmem %s1046_s24, 1024  ;;  %s925_s23 = smov [#allocation7]  }
  0x39   : > { %p813_p13 = scmp.ne.s32.totalorder %s1046_s24, %s812_s20  ;;  %s817_s28 = sshll.u32 %s925_s23, 4  ;;  %s818_s28 = int_to_ptr.vmem [resolvable:$false] %s817_s28 }
  0x3a   : > { %s819_s12 = scalar_lea.vmem %s818_s28, 2048  ;;  %p820_p10 = scmp.lt.s32.totalorder %s1046_s24, %s818_s28 }
  0x3b   : > { %p815_p4 = pnand %p813_p13, %p773_p7  ;;  %p821_p0 = scmp.lt.s32.totalorder %s819_s12, %s812_s20 }
  0x3d   : > { %p816_p6 = pneg %p815_p4  ;;  %p822_p1 = por %p821_p0, %p820_p10 }
  0x3f   : > { %p823_p9 = pnand %p822_p1, %p816_p6 }
  0x41   : > { %826 = shalt.err (!%p823_p9)
}
  0x42   : > { %s926_s5 = smov 256   ;;  %p829_p7 = pneg %p1064_p3 }
  0x43   : > { %707 = dma.hbm_to_vmem [thread:$0]  (!%p992_p5), %s1058_s7, 1024, %s1046_s24, %s1000_s4, %s926_s5, %s922_s21, %s923_s22  }
  0x44   : > { %s838_s6 = scalar_lea.vmem %s1060_s30, 1024  ;;  %p846_p1 = scmp.lt.s32.totalorder %s1060_s30, %s1060_s30 }
  0x45   : > { %p839_p13 = scmp.ne.s32.totalorder %s1060_s30, %s838_s6  ;;  %p847_p8 = scmp.lt.s32.totalorder %s838_s6, %s838_s6 }
  0x47   : > { %p841_p10 = pnand %p839_p13, %p829_p7  ;;  %p848_p11 = por %p847_p8, %p846_p1 }
  0x49   : > { %p842_p0 = pneg %p841_p10 }
  0x4b   : > { %p849_p12 = pnand %p848_p11, %p842_p0 }
  0x4d   : > { %852 = shalt.err (!%p849_p12)
}
  0x4e   : > { %700 = dma.hbm_to_vmem [thread:$0]  (!%p1064_p3), %s1165_s0, 1024, %s1060_s30, [#allocation3], %s922_s21, %s922_s21, %s923_s22  }
  0x4f   : > { %p1176_p5 = scmp.ne.s32.totalorder %s1174_s26, 0 }
  0x50   : > { %p1177_p2 = scmp.eq.s32.totalorder (!%p1176_p5), %s1032_s25, 0 }
  0x51   : > { %186 = sbr.rel (%p1176_p5) target bundleno = 675 (0x2a3), region = 32 }
  0x56   : > { %894 = dma.done.wait (%p1177_p2), [#allocation3], 1024   ;;  %p1178_p4 = pmov %p1177_p2 }
  0x57   : > { %s192_s24 = sand.u32 1, %s1032_s25   ;;  %s194_s7 = sand.u32 1, %s911_s13  }
  0x58   : > { %896 = vsyncadd (%p1178_p4), [#allocation3], 4294966272  ;;  %s606_s8 = sshll.u32 %s194_s7, 7  ;;  %s193_s9 = scalar_lea.sflag [#allocation6], %s192_s24 }
  0x59   : > { %s1116_s15 = scalar_lea.vmem [#allocation5], %s606_s8  ;;  %p1179_p6 = scmp.ne.s32.totalorder %s1173_s27, 0 }
  0x5b   : > { %898 = dma.done.wait (%p1179_p6), %s193_s9, 3072  }
  0x5c   : > { %900 = vsyncadd (%p1179_p6), %s193_s9, 4294964224  ;;  %p1180_p3 = scmp.ne.s32.totalorder %s1032_s25, 0 }
  0x5e   : > { %233 = sbr.rel (%p1180_p3) target bundleno = 104 (0x68), region = 48 }
  0x63   : > { %v927_v0 = vmov 0.0  }
  0x64   : > { %234 = vst [vmem:[#allocation8] sm:$0xff] %v927_v0  ;;  %235 = vst [vmem:[#allocation8 + $0x8] sm:$0xff] %v927_v0 }
  0x65   : > { %236 = vst [vmem:[#allocation8 + $0x10] sm:$0xff] %v927_v0  ;;  %237 = vst [vmem:[#allocation8 + $0x18] sm:$0xff] %v927_v0 }
  0x66   : > { %238 = vst [vmem:[#allocation8 + $0x20] sm:$0xff] %v927_v0  ;;  %239 = vst [vmem:[#allocation8 + $0x28] sm:$0xff] %v927_v0 }
  0x67   : > { %240 = vst [vmem:[#allocation8 + $0x30] sm:$0xff] %v927_v0  ;;  %241 = vst [vmem:[#allocation8 + $0x38] sm:$0xff] %v927_v0 }
  0x68 PF: > { %v276_v1 = vld [vmem:[%s1116_s15 + $0x70] sm:$0xff]  ;;  %v277_v2 = vld [vmem:[%s1116_s15 + $0x78] sm:$0xff]  ;;  %v274_v3 = vld [vmem:[%s1116_s15 + $0x60] sm:$0xff]  ;;  %s928_s21 = smov [#allocation8]   ;;  %p711_p9 = scmp.eq.s32.totalorder %s1032_s25, 1 }
  0x69   : > { %v285_v4 = vpack.c.bf16 %v277_v2, %v276_v1  ;;  %v275_v5 = vld [vmem:[%s1116_s15 + $0x68] sm:$0xff]  ;;  %v272_v7 = vld [vmem:[%s1116_s15 + $0x50] sm:$0xff]  ;;  %v273_v8 = vld [vmem:[%s1116_s15 + $0x58] sm:$0xff]  ;;  %s510_s22 = sshll.u32 %s928_s21, 4  ;;  %s511_s22 = int_to_ptr.vmem [resolvable:$true] %s510_s22 }
  0x6a   : > { %v284_v6 = vpack.c.bf16 %v275_v5, %v274_v3  ;;  %v242_v9 = vld [vmem:[#allocation2] sm:$0xff]  ;;  %v243_v10 = vld [vmem:[#allocation2 + $0x8] sm:$0xff]  ;;  %v283_v13 = vpack.c.bf16 %v273_v8, %v272_v7  ;;  %v268_v18 = vld [vmem:[%s1116_s15 + $0x30] sm:$0xff]  ;;  %s853_s27 = scalar_lea.vmem %s511_s22, 1024  ;;  %p860_p0 = scmp.lt.s32.totalorder %s511_s22, %s511_s22 }
  0x6b   : > { %637 = vmatprep.subr.bf16.mxu0 %v285_v4  ;;  %661 = vmatprep.subr.bf16.mxu1 %v285_v4  ;;  %v250_v11 = vmul.f32 0.03608439, %v242_v9  ;;  %v251_v12 = vmul.f32 0.03608439, %v243_v10  ;;  %v270_v14 = vld [vmem:[%s1116_s15 + $0x40] sm:$0xff]  ;;  %v271_v15 = vld [vmem:[%s1116_s15 + $0x48] sm:$0xff]  ;;  %p854_p7 = scmp.ne.s32.totalorder %s511_s22, %s853_s27  ;;  %p861_p1 = scmp.lt.s32.totalorder %s853_s27, %s853_s27 }
  0x6c   : > { %638 = vmatpush3.bf16.xpose.msra.mxu0 %v285_v4  ;;  %662 = vmatpush3.bf16.msra.mxu1 %v285_v4  ;;  %v282_v17 = vpack.c.bf16 %v271_v15, %v270_v14  ;;  %v269_v19 = vld [vmem:[%s1116_s15 + $0x38] sm:$0xff]  ;;  %v266_v21 = vld [vmem:[%s1116_s15 + $0x20] sm:$0xff]  ;;  %v267_v22 = vld [vmem:[%s1116_s15 + $0x28] sm:$0xff] }
  0x6d   : > { %639 = vmatprep.subr.bf16.mxu0 %v284_v6  ;;  %663 = vmatprep.subr.bf16.mxu1 %v284_v6  ;;  %v258_v16 = vpack.c.bf16 %v251_v12, %v250_v11  ;;  %v281_v20 = vpack.c.bf16 %v269_v19, %v268_v18  ;;  %v280_v23 = vpack.c.bf16 %v267_v22, %v266_v21  ;;  %v264_v24 = vld [vmem:[%s1116_s15 + $0x10] sm:$0xff]  ;;  %v265_v25 = vld [vmem:[%s1116_s15 + $0x18] sm:$0xff]  ;;  %v262_v27 = vld [vmem:[%s1116_s15] sm:$0xff]  ;;  %p855_p13 = pnand %p854_p7, %p711_p9  ;;  %p862_p8 = por %p861_p1, %p860_p0 }
  0x6e   : > { %v279_v26 = vpack.c.bf16 %v265_v25, %v264_v24  ;;  %v263_v28 = vld [vmem:[%s1116_s15 + $0x8] sm:$0xff]  ;;  %v244_v30 = vld [vmem:[#allocation2 + $0x10] sm:$0xff]  ;;  %v245_v31 = vld [vmem:[#allocation2 + $0x18] sm:$0xff] }
  0x6f   : > { %653 = vmatprep.mubr.bf16.mxu0 %v258_v16  ;;  %v278_v29 = vpack.c.bf16 %v263_v28, %v262_v27  ;;  %v246_v32 = vld [vmem:[#allocation2 + $0x20] sm:$0xff]  ;;  %v247_v33 = vld [vmem:[#allocation2 + $0x28] sm:$0xff]  ;;  %v252_v34 = vmul.f32 0.03608439, %v244_v30  ;;  %v253_v35 = vmul.f32 0.03608439, %v245_v31  ;;  %p856_p10 = pneg %p855_p13 }
  0x70   : > { %664 = vmatpush3.bf16.msra.mxu1 %v284_v6  ;;  %v254_v36 = vmul.f32 0.03608439, %v246_v32  ;;  %v255_v37 = vmul.f32 0.03608439, %v247_v33  ;;  %v248_v40 = vld [vmem:[#allocation2 + $0x30] sm:$0xff]  ;;  %v249_v41 = vld [vmem:[#allocation2 + $0x38] sm:$0xff] }
  0x71   : > { %665 = vmatprep.subr.bf16.mxu1 %v283_v13  ;;  %v259_v38 = vpack.c.bf16 %v253_v35, %v252_v34  ;;  %v256_v42 = vmul.f32 0.03608439, %v248_v40  ;;  %v257_v43 = vmul.f32 0.03608439, %v249_v41  ;;  %p863_p11 = pnand %p862_p8, %p856_p10 }
  0x72   : > { %v260_v39 = vpack.c.bf16 %v255_v37, %v254_v36 }
  0x73   : > { %v261_v44 = vpack.c.bf16 %v257_v43, %v256_v42 }
  0x74   : > { %640 = vmatpush3.bf16.xpose.msra.mxu0 %v284_v6  ;;  %666 = vmatpush3.bf16.msra.mxu1 %v283_v13 }
  0x75   : > { %641 = vmatprep.subr.bf16.mxu0 %v283_v13  ;;  %667 = vmatprep.subr.bf16.mxu1 %v282_v17 }
  0x78   : > { %668 = vmatpush3.bf16.msra.mxu1 %v282_v17 }
  0x79   : > { %669 = vmatprep.subr.bf16.mxu1 %v281_v20 }
  0x7c   : > { %642 = vmatpush3.bf16.xpose.msra.mxu0 %v283_v13  ;;  %670 = vmatpush3.bf16.msra.mxu1 %v281_v20 }
  0x7d   : > { %643 = vmatprep.subr.bf16.mxu0 %v282_v17  ;;  %671 = vmatprep.subr.bf16.mxu1 %v280_v23 }
  0x80   : > { %672 = vmatpush3.bf16.msra.mxu1 %v280_v23 }
  0x81   : > { %673 = vmatprep.subr.bf16.mxu1 %v279_v26 }
  0x84   : > { %644 = vmatpush3.bf16.xpose.msra.mxu0 %v282_v17  ;;  %674 = vmatpush3.bf16.msra.mxu1 %v279_v26 }
  0x85   : > { %645 = vmatprep.subr.bf16.mxu0 %v281_v20  ;;  %675 = vmatprep.subr.bf16.mxu1 %v278_v29 }
  0x88   : > { %676 = vmatpush3.bf16.msra.mxu1 %v278_v29 }
  0x8c   : > { %646 = vmatpush3.bf16.xpose.msra.mxu0 %v281_v20 }
  0x8d   : > { %647 = vmatprep.subr.bf16.mxu0 %v280_v23 }
  0x94   : > { %648 = vmatpush3.bf16.xpose.msra.mxu0 %v280_v23 }
  0x95   : > { %649 = vmatprep.subr.bf16.mxu0 %v279_v26 }
  0x9c   : > { %650 = vmatpush3.bf16.xpose.msra.mxu0 %v279_v26 }
  0x9d   : > { %651 = vmatprep.subr.bf16.mxu0 %v278_v29 }
  0xa4   : > { %652 = vmatpush3.bf16.xpose.msra.mxu0 %v278_v29 }
  0xab   : > { %654 = vmatmul.mubr.bf16.vlgmr.msra.gmra.mxu0 %v259_v38 }
  0xac   : > { %657 = vmatprep.mubr.bf16.mxu0 %v260_v39 }
  0xb3   : > { %658 = vmatmul.mubr.bf16.gmra.mxu0 %v261_v44 }
 0x16b   : > { %v655_v45 = vpop.f32.mrf.mxu0 }
 0x16d   : > { %v320_v46 = vpop.f32.mrf.mxu0 }
 0x16f   : > { %v656_v47 = vpop.f32.mrf.mxu0 }
 0x171   : > { %v323_v48 = vpop.f32.mrf.mxu0 }
 0x173   : > { %v659_v49 = vpop.f32.mrf.mxu0 }
 0x174   : > { %v353_v54 = vmax.f32 %v655_v45, %v659_v49 }
 0x175   : > { %v336_v50 = vpop.f32.mrf.mxu0 }
 0x176   : > { %v351_v55 = vmax.f32 %v320_v46, %v336_v50 }
 0x177   : > { %v660_v51 = vpop.f32.mrf.mxu0 }
 0x178   : > { %v354_v52 = vmax.f32 %v656_v47, %v660_v51 }
 0x179   : > { %v339_v53 = vpop.f32.mrf.mxu0 }
 0x17a   : > { %v352_v56 = vmax.f32 %v323_v48, %v339_v53  ;;  %v356_v57 = vmax.f32 %v353_v54, %v354_v52  ;;  %v413_v52 = vld [vmem:[#allocation8 + $0x10] sm:$0xff]  ;;  %v411_v54 = vld [vmem:[#allocation8] sm:$0xff] }
 0x17c   : > { %v355_v58 = vmax.f32 %v351_v55, %v352_v56 }
 0x17e   : > { %v357_v59 = vmax.f32 %v355_v58, %v356_v57  ;;  %v414_v57 = vld [vmem:[#allocation8 + $0x18] sm:$0xff] }
 0x180   : > { %v358_v60 = vrot.slane %v357_v59, 4 }
 0x182   : > { %v359_v61 = vmax.f32 %v357_v59, %v358_v60  ;;  %v412_v60 = vld [vmem:[#allocation8 + $0x8] sm:$0xff] }
 0x184   : > { %v360_v62 = vrot.slane %v359_v61, 2 }
 0x186   : > { %v361_v63 = vmax.f32 %v359_v61, %v360_v62 }
 0x188   : > { %v362_v0 = vrot.slane %v361_v63, 1 }
 0x18a   : > { %v363_v1 = vmax.f32 %v361_v63, %v362_v0  ;;  %v417_v63 = vld [vmem:[#allocation8 + $0x30] sm:$0xff] }
 0x18c   : > { %v364_v2 = vsub.f32 %v320_v46, %v363_v1  ;;  %v365_v3 = vsub.f32 %v323_v48, %v363_v1  ;;  %v366_v4 = vsub.f32 %v655_v45, %v363_v1  ;;  %v367_v5 = vsub.f32 %v656_v47, %v363_v1 }
 0x18d   : > { %v368_v8 = vsub.f32 %v336_v50, %v363_v1  ;;  %v369_v10 = vsub.f32 %v339_v53, %v363_v1  ;;  %v370_v12 = vsub.f32 %v659_v49, %v363_v1  ;;  %v371_v14 = vsub.f32 %v660_v51, %v363_v1 }
 0x18e   : > { %v372_v6 = vmul.f32 1.442695, %v364_v2  ;;  %v374_v7 = vmul.f32 1.442695, %v365_v3  ;;  %v376_v9 = vmul.f32 1.442695, %v366_v4 }
 0x18f   : > { %v378_v11 = vmul.f32 1.442695, %v367_v5  ;;  %v380_v13 = vmul.f32 1.442695, %v368_v8  ;;  %v382_v15 = vmul.f32 1.442695, %v369_v10 }
 0x190   : > { %753 = vpow2.f32 %v372_v6  ;;  %v384_v16 = vmul.f32 1.442695, %v370_v12  ;;  %v386_v17 = vmul.f32 1.442695, %v371_v14  ;;  %v415_v2 = vld [vmem:[#allocation8 + $0x20] sm:$0xff]  ;;  %v418_v5 = vld [vmem:[#allocation8 + $0x38] sm:$0xff] }
 0x191   : > { %755 = vpow2.f32 %v374_v7  ;;  %v416_v8 = vld [vmem:[#allocation8 + $0x28] sm:$0xff] }
 0x192   : > { %757 = vpow2.f32 %v376_v9 }
 0x193   : > { %759 = vpow2.f32 %v378_v11 }
 0x194   : > { %761 = vpow2.f32 %v380_v13 }
 0x195   : > { %763 = vpow2.f32 %v382_v15 }
 0x196   : > { %765 = vpow2.f32 %v384_v16 }
 0x197   : > { %767 = vpow2.f32 %v386_v17 }
 0x19d   : > { %v754_v18 = vpop.eup %753 }
 0x19e   : > { %v756_v19 = vpop.eup %755 }
 0x19f   : > { %v388_v20 = vadd.f32 %v756_v19, %v754_v18  ;;  %v758_v21 = vpop.eup %757 }
 0x1a0   : > { %v760_v23 = vpop.eup %759 }
 0x1a1   : > { %v389_v22 = vadd.f32 %v758_v21, %v388_v20  ;;  %v762_v25 = vpop.eup %761 }
 0x1a2   : > { %v764_v27 = vpop.eup %763 }
 0x1a3   : > { %v390_v24 = vadd.f32 %v760_v23, %v389_v22  ;;  %v766_v29 = vpop.eup %765 }
 0x1a4   : > { %v768_v31 = vpop.eup %767 }
 0x1a5   : > { %v391_v26 = vadd.f32 %v762_v25, %v390_v24 }
 0x1a7   : > { %v392_v28 = vadd.f32 %v764_v27, %v391_v26 }
 0x1a9   : > { %v393_v30 = vadd.f32 %v766_v29, %v392_v28 }
 0x1ab   : > { %v394_v32 = vadd.f32 %v768_v31, %v393_v30 }
 0x1ad   : > { %v395_v33 = vrot.slane %v394_v32, 4 }
 0x1af   : > { %v396_v34 = vadd.f32 %v395_v33, %v394_v32 }
 0x1b1   : > { %v397_v35 = vrot.slane %v396_v34, 2 }
 0x1b3   : > { %v398_v36 = vadd.f32 %v397_v35, %v396_v34 }
 0x1b5   : > { %v399_v37 = vrot.slane %v398_v36, 1 }
 0x1b7   : > { %v400_v38 = vadd.f32 %v399_v37, %v398_v36 }
 0x1b9   : > { %769 = vrcp.f32 %v400_v38 }
 0x1c6   : > { %v770_v39 = vpop.eup %769 }
 0x1c7   : > { %v403_v40 = vmul.f32 %v770_v39, %v754_v18  ;;  %v404_v41 = vmul.f32 %v770_v39, %v756_v19  ;;  %v405_v42 = vmul.f32 %v770_v39, %v758_v21  ;;  %v406_v43 = vmul.f32 %v770_v39, %v760_v23 }
 0x1c8   : > { %v407_v44 = vmul.f32 %v770_v39, %v762_v25  ;;  %v408_v45 = vmul.f32 %v770_v39, %v764_v27  ;;  %v409_v49 = vmul.f32 %v770_v39, %v766_v29  ;;  %v410_v50 = vmul.f32 %v770_v39, %v768_v31 }
 0x1c9   : > { %v419_v46 = vpack.c.bf16 %v404_v41, %v403_v40  ;;  %v420_v47 = vpack.c.bf16 %v406_v43, %v405_v42 }
 0x1ca   : > { %v421_v48 = vpack.c.bf16 %v408_v45, %v407_v44  ;;  %v422_v51 = vpack.c.bf16 %v410_v50, %v409_v49 }
 0x1cb   : > { %677 = vmatprep.mubr.bf16.mxu1 %v419_v46 }
 0x1cc   : > { %678 = vmatmul.mubr.bf16.vlgmr.msra.gmra.mxu1 %v420_v47 }
 0x1cd   : > { %681 = vmatprep.mubr.bf16.mxu1 %v421_v48 }
 0x1d4   : > { %682 = vmatmul.mubr.bf16.gmra.mxu1 %v422_v51 }
 0x28c   : > { %v679_v53 = vpop.f32.mrf.mxu1 }
 0x28d   : > { %v490_v55 = vadd.f32 %v679_v53, %v413_v52 }
 0x28e   : > { %v457_v56 = vpop.f32.mrf.mxu1 }
 0x28f   : > { %498 = vst [vmem:[#allocation8 + $0x10] sm:$0xff] %v490_v55  ;;  %v488_v58 = vadd.f32 %v457_v56, %v411_v54 }
 0x290   : > { %v680_v59 = vpop.f32.mrf.mxu1 }
 0x291   : > { %496 = vst [vmem:[#allocation8] sm:$0xff] %v488_v58  ;;  %v491_v61 = vadd.f32 %v680_v59, %v414_v57 }
 0x292   : > { %v460_v62 = vpop.f32.mrf.mxu1 }
 0x293   : > { %499 = vst [vmem:[#allocation8 + $0x18] sm:$0xff] %v491_v61  ;;  %v489_v0 = vadd.f32 %v460_v62, %v412_v60 }
 0x294   : > { %v683_v1 = vpop.f32.mrf.mxu1 }
 0x295   : > { %497 = vst [vmem:[#allocation8 + $0x8] sm:$0xff] %v489_v0  ;;  %v494_v3 = vadd.f32 %v683_v1, %v417_v63 }
 0x296   : > { %v473_v4 = vpop.f32.mrf.mxu1 }
 0x297   : > { %502 = vst [vmem:[#allocation8 + $0x30] sm:$0xff] %v494_v3  ;;  %v492_v6 = vadd.f32 %v473_v4, %v415_v2 }
 0x298   : > { %v684_v7 = vpop.f32.mrf.mxu1 }
 0x299   : > { %500 = vst [vmem:[#allocation8 + $0x20] sm:$0xff] %v492_v6  ;;  %v495_v9 = vadd.f32 %v684_v7, %v418_v5 }
 0x29a   : > { %v476_v10 = vpop.f32.mrf.mxu1 }
 0x29b   : > { %503 = vst [vmem:[#allocation8 + $0x38] sm:$0xff] %v495_v9  ;;  %v493_v11 = vadd.f32 %v476_v10, %v416_v8 }
 0x29d   : > { %501 = vst [vmem:[#allocation8 + $0x28] sm:$0xff] %v493_v11 }
 0x29e   : > { %866 = shalt.err (!%p863_p11)
}
 0x29f   : > { %s929_s26 = smov 128   ;;  %s930_s30 = smov 8  }
 0x2a0   : > { %694 = dma.vmem_to_hbm [thread:$0]  (%p711_p9), %s511_s22, 1024, %s1168_s3, [#allocation4], %s929_s26, %s929_s26, %s930_s30  }
 0x2a1   : > { %902 = dma.done.wait (%p711_p9), [#allocation4], 1024  }
 0x2a2   : > { %904 = vsyncadd (%p711_p9), [#allocation4], 4294966272 }
 0x2a3 PF: > { %p15_p12 = scmp.ge.s32.totalorder %s972_s16, 4   ;;  %s1181_s12 = smov %s911_s13 }
 0x2a4   : > { %s1182_s13 = smov %s915_s14  ;;  %s1183_s14 = smov %s981_s19 }
 0x2a5   : > { %s1184_s15 = smov %s972_s16  ;;  %17 = sbr.rel (!%p15_p12) target bundleno = 5 (0x5), region = 89 }
 0x2aa   :  { %526 = vsyncpa [#allocation3], 1 }
 0x2ab   :  { %528 = vsyncpa [#allocation3 + $0x1], 1 }
 0x2ac   :  { %529 = vsyncpa [#allocation6], 1 }
 0x2ad   :  { %531 = vsyncpa [#allocation6 + $0x1], 1 }
 0x2ae   :  { %532 = vsyncpa [#allocation4], 1 }
 0x2af   :  { %534 = vsyncpa [#allocation4 + $0x1], 1 }

</bundles_post_ra>
